<compile_context>
chip_gen: v7x
topology: tpu7x:2x2x1
jax: 0.10.0
libtpu: 0.0.40
codegen_flags: <defaults>
</compile_context>

<pallas_src>
from functools import partial

import jax
import jax.numpy as jnp
from jax.experimental import pallas as pl
from jax.experimental.pallas import tpu as pltpu

GATE_STRIDE = 128  # lane-aligned per-gate block (>= hidden_dim, multiple of 128)


def _round_up(x, m):
    return (x + m - 1) // m * m


def _lstm_tagger_kernel(ids_ref, table_ref, w_ref, wtag_ref, out_ref, hs_ref, *,
                        seq_len, emb_dim, hidden_dim):
    G = GATE_STRIDE
    E1 = emb_dim + 1          # embedding cols + the folded-bias "1" column
    H = hidden_dim

    # ---- Embedding lookup (nn.Embedding): dynamic row gather from the tiny VMEM table.
    rows = [table_ref[pl.ds(ids_ref[t], 1), :] for t in range(seq_len)]
    emb_aug = jnp.concatenate(rows, axis=0)                                  # (S, 16)

    # ---- Input projection + bias for the whole sequence: ONE MXU matmul.
    # emb_aug columns >= E1 are zero, so the W_hh rows stored below row E1 of the
    # slab contribute nothing here.
    x_proj = jnp.dot(emb_aug, w_ref[...], preferred_element_type=jnp.float32)  # (S, 4G)

    # ---- Loop-invariant recurrent weight rows: W_hh^T row j, shape (1, 4G).
    w_h = [w_ref[E1 + j:E1 + j + 1, :] for j in range(H)]

    # One-hot lane masks used to extract h_j as a broadcastable (1,1) scalar.
    lane = jax.lax.broadcasted_iota(jnp.int32, (1, G), 1)
    onehot = [(lane == j).astype(jnp.float32) for j in range(H)]

    # ---- Recurrence: VPU/EUP only on the serial h->h chain (no MXU).
    # Padded lanes (index >= H) stay exactly zero: their gates are 0, so
    # sigmoid(0)=0.5, tanh(0)=0 -> c_pad' = 0.5*0 + 0.5*0 = 0, h_pad' = 0.5*tanh(0) = 0.
    h = jnp.zeros((1, G), jnp.float32)
    c = jnp.zeros((1, G), jnp.float32)
    for t in range(seq_len):
        gates = x_proj[t:t + 1, :]                                           # (1, 4G)
        for j in range(H):
            hj = jnp.sum(h * onehot[j], axis=1, keepdims=True)               # (1, 1)
            gates = gates + hj * w_h[j]                                      # VPU FMA
        i_g = jax.nn.sigmoid(gates[:, 0 * G:1 * G])   # lane-aligned vreg slices
        f_g = jax.nn.sigmoid(gates[:, 1 * G:2 * G])
        g_g = jnp.tanh(gates[:, 2 * G:3 * G])
        o_g = jax.nn.sigmoid(gates[:, 3 * G:4 * G])
        c = f_g * c + i_g * g_g
        h = o_g * jnp.tanh(c)
        hs_ref[pl.ds(t, 1), :] = h                    # plain vst, off the serial chain

    # ---- hidden2tag + log_softmax once over the whole sequence; single dense store.
    hs = hs_ref[...][:, :8]                                                  # (S, 8)
    # Lanes >= H of h are provably zero, so lane H can carry the "1" that multiplies
    # the b_tag row stored at row H of wtag_slab (bias folded into the matmul).
    bias_onehot = (jax.lax.broadcasted_iota(jnp.int32, (1, 8), 1) == H).astype(jnp.float32)
    hs_aug = hs + bias_onehot
    tag = jnp.dot(hs_aug, wtag_ref[...], preferred_element_type=jnp.float32)  # (S, T)
    m = jnp.max(tag, axis=1, keepdims=True)
    lse = jnp.log(jnp.sum(jnp.exp(tag - m), axis=1, keepdims=True)) + m
    out_ref[...] = tag - lse


def prepare_params(emb_table, w_ih, w_hh, b_ih, b_hh, w_tag, b_tag):
    """One-time parameter packing (hoisted out of the per-sentence path)."""
    V, E = emb_table.shape
    H = w_hh.shape[1]
    T = w_tag.shape[0]
    G = GATE_STRIDE
    assert H <= G and H + 1 <= 8
    K = _round_up(E + 1 + H, 8)                       # slab rows (16 for E=10, H=3)

    # Augmented embedding table: [embedding | 1.0 | zeros] -> (V, K)
    table_aug = jnp.zeros((V, K), jnp.float32)
    table_aug = table_aug.at[:, :E].set(jnp.asarray(emb_table, jnp.float32))
    table_aug = table_aug.at[:, E].set(1.0)

    # Packed weight slab (K, 4G): rows [0:E)=W_ih^T, row E=b_ih+b_hh, rows [E+1:E+1+H)=W_hh^T.
    wih_t = jnp.asarray(w_ih, jnp.float32).T          # (E, 4H), gate order [i, f, g, o]
    whh_t = jnp.asarray(w_hh, jnp.float32).T          # (H, 4H)
    b = (b_ih + b_hh).astype(jnp.float32)             # (4H,)
    w_slab = jnp.zeros((K, 4 * G), jnp.float32)
    for g in range(4):
        w_slab = w_slab.at[:E, g * G:g * G + H].set(wih_t[:, g * H:(g + 1) * H])
        w_slab = w_slab.at[E, g * G:g * G + H].set(b[g * H:(g + 1) * H])
        w_slab = w_slab.at[E + 1:E + 1 + H, g * G:g * G + H].set(whh_t[:, g * H:(g + 1) * H])

    # Tag slab (8, T): rows [0:H)=W_tag^T, row H=b_tag, rest zero.
    wtag_slab = jnp.zeros((8, T), jnp.float32)
    wtag_slab = wtag_slab.at[:H, :].set(jnp.asarray(w_tag, jnp.float32).T)
    wtag_slab = wtag_slab.at[H, :].set(jnp.asarray(b_tag, jnp.float32))

    return dict(table_aug=table_aug, w_slab=w_slab, wtag_slab=wtag_slab,
                emb_dim=E, hidden_dim=H, tagset=T)


def lstm_tagger_forward(sentence_ids, params):
    """sentence_ids: (S,) int; params from prepare_params. Returns (S, T) log-softmax scores."""
    S = int(sentence_ids.shape[0])
    T = params["tagset"]
    kernel = partial(_lstm_tagger_kernel, seq_len=S,
                     emb_dim=params["emb_dim"], hidden_dim=params["hidden_dim"])
    smem = pl.BlockSpec(memory_space=pltpu.MemorySpace.SMEM)
    vmem = pl.BlockSpec(memory_space=pltpu.MemorySpace.VMEM)
    return pl.pallas_call(
        kernel,
        out_shape=jax.ShapeDtypeStruct((S, T), jnp.float32),
        in_specs=[smem, vmem, vmem, vmem],
        out_specs=vmem,
        scratch_shapes=[pltpu.VMEM((S, GATE_STRIDE), jnp.float32)],
    )(sentence_ids.astype(jnp.int32), params["table_aug"],
      params["w_slab"], params["wtag_slab"])


def ref_forward(embeds, w_ih, w_hh, b_ih, b_hh, w_tag, b_tag):
    """Pure-JAX reference matching torch.nn.LSTM semantics (gate order i, f, g, o)."""
    H = w_hh.shape[1]
    h = jnp.zeros((1, H), jnp.float32)
    c = jnp.zeros((1, H), jnp.float32)
    outs = []
    for t in range(embeds.shape[0]):
        x = embeds[t:t + 1]
        gates = x @ w_ih.T + h @ w_hh.T + b_ih + b_hh
        i_g = jax.nn.sigmoid(gates[:, :H])
        f_g = jax.nn.sigmoid(gates[:, H:2 * H])
        g_g = jnp.tanh(gates[:, 2 * H:3 * H])
        o_g = jax.nn.sigmoid(gates[:, 3 * H:])
        c = f_g * c + i_g * g_g
        h = o_g * jnp.tanh(c)
        outs.append(h)
    lstm_out = jnp.concatenate(outs, axis=0)
    tag_space = lstm_out @ w_tag.T + b_tag
    return jax.nn.log_softmax(tag_space, axis=1)


if __name__ == "__main__":
    # Build vocab exactly like the reference script
    train_data = [
        ("The cat ate the fish".split(), ["DET", "NN", "V", "DET", "NN"]),
        ("They read that book".split(), ["NN", "V", "DET", "NN"]),
    ]
    word_to_ix = {}
    for sent, _ in train_data:
        for w in sent:
            if w not in word_to_ix:
                word_to_ix[w] = len(word_to_ix)
    tag_to_idx = {"DET": 0, "NN": 1, "V": 2}

    EMBEDDING_DIM = 10
    HIDDEN_DIM = 3
    VOCAB_SIZE = len(word_to_ix)
    TAGSET_SIZE = len(tag_to_idx)

    # Deterministic synthetic parameters (shapes match nn.Embedding / nn.LSTM / nn.Linear)
    key = jax.random.PRNGKey(0)
    k_emb, k_wih, k_whh, k_bih, k_bhh, k_wt, k_bt = jax.random.split(key, 7)
    k = 1.0 / jnp.sqrt(HIDDEN_DIM)
    emb_table = jax.random.normal(k_emb, (VOCAB_SIZE, EMBEDDING_DIM), jnp.float32)
    w_ih = jax.random.uniform(k_wih, (4 * HIDDEN_DIM, EMBEDDING_DIM), jnp.float32, -k, k)
    w_hh = jax.random.uniform(k_whh, (4 * HIDDEN_DIM, HIDDEN_DIM), jnp.float32, -k, k)
    b_ih = jax.random.uniform(k_bih, (4 * HIDDEN_DIM,), jnp.float32, -k, k)
    b_hh = jax.random.uniform(k_bhh, (4 * HIDDEN_DIM,), jnp.float32, -k, k)
    w_tag = jax.random.uniform(k_wt, (TAGSET_SIZE, HIDDEN_DIM), jnp.float32, -k, k)
    b_tag = jax.random.uniform(k_bt, (TAGSET_SIZE,), jnp.float32, -k, k)

    # One-time parameter packing (hoisted out of the per-sentence path).
    packed = prepare_params(emb_table, w_ih, w_hh, b_ih, b_hh, w_tag, b_tag)

    # prepare_sequence(train_data[0][0], word_to_ix)
    sentence_ids = jnp.asarray([word_to_ix[w] for w in train_data[0][0]], jnp.int32)

    # Embedding gather, LSTM, linear, and log_softmax all run inside the kernel.
    tag_scores = lstm_tagger_forward(sentence_ids, packed)
    tag_scores = jax.block_until_ready(tag_scores)

    expected = ref_forward(emb_table[sentence_ids], w_ih, w_hh, b_ih, b_hh, w_tag, b_tag)
    assert tag_scores.shape == (len(train_data[0][0]), TAGSET_SIZE)
    assert jnp.allclose(tag_scores, expected, atol=1e-5, rtol=1e-5)
    print("KERNEL_OK")
</pallas_src>

<mosaic_0001>
module attributes {stable_mosaic.version = 11 : i64} {
  func.func @_lstm_tagger_kernel(%arg0: memref<5xi32, #tpu.memory_space<smem>>, %arg1: memref<9x16xf32, #tpu.memory_space<vmem>>, %arg2: memref<16x512xf32, #tpu.memory_space<vmem>>, %arg3: memref<8x3xf32, #tpu.memory_space<vmem>>, %arg4: memref<5x3xf32, #tpu.memory_space<vmem>>, %arg5: memref<5x128xf32, #tpu.memory_space<vmem>>) attributes {dimension_semantics = [], scalar_prefetch = 0 : i64, scratch_operands = 1 : i64, tpu.core_type = #tpu.core_type<tc>} {
    %c0 = arith.constant 0 : index
    %0 = memref.load %arg0[%c0] : memref<5xi32, #tpu.memory_space<smem>>
    %1 = arith.index_cast %0 : i32 to index
    %c0_0 = arith.constant 0 : index
    %2 = vector.load %arg1[%1, %c0_0] : memref<9x16xf32, #tpu.memory_space<vmem>>, vector<1x16xf32>
    %c1 = arith.constant 1 : index
    %3 = memref.load %arg0[%c1] : memref<5xi32, #tpu.memory_space<smem>>
    %4 = arith.index_cast %3 : i32 to index
    %c0_1 = arith.constant 0 : index
    %5 = vector.load %arg1[%4, %c0_1] : memref<9x16xf32, #tpu.memory_space<vmem>>, vector<1x16xf32>
    %c2 = arith.constant 2 : index
    %6 = memref.load %arg0[%c2] : memref<5xi32, #tpu.memory_space<smem>>
    %7 = arith.index_cast %6 : i32 to index
    %c0_2 = arith.constant 0 : index
    %8 = vector.load %arg1[%7, %c0_2] : memref<9x16xf32, #tpu.memory_space<vmem>>, vector<1x16xf32>
    %c3 = arith.constant 3 : index
    %9 = memref.load %arg0[%c3] : memref<5xi32, #tpu.memory_space<smem>>
    %10 = arith.index_cast %9 : i32 to index
    %c0_3 = arith.constant 0 : index
    %11 = vector.load %arg1[%10, %c0_3] : memref<9x16xf32, #tpu.memory_space<vmem>>, vector<1x16xf32>
    %c4 = arith.constant 4 : index
    %12 = memref.load %arg0[%c4] : memref<5xi32, #tpu.memory_space<smem>>
    %13 = arith.index_cast %12 : i32 to index
    %c0_4 = arith.constant 0 : index
    %14 = vector.load %arg1[%13, %c0_4] : memref<9x16xf32, #tpu.memory_space<vmem>>, vector<1x16xf32>
    %15 = tpu.concatenate %2, %5, %8, %11, %14 in 0 : vector<1x16xf32>, vector<1x16xf32>, vector<1x16xf32>, vector<1x16xf32>, vector<1x16xf32> -> vector<5x16xf32>
    %c0_5 = arith.constant 0 : index
    %c0_6 = arith.constant 0 : index
    %16 = vector.load %arg2[%c0_5, %c0_6] : memref<16x512xf32, #tpu.memory_space<vmem>>, vector<16x512xf32>
    %cst = arith.constant dense<0.000000e+00> : vector<5x512xf32>
    %17 = tpu.matmul %15, %16, %cst {dimension_numbers = #tpu.dot_dimension_numbers<[1], [0], [0], [1], [0, 0, 1, 1], [], []>} : vector<5x16xf32>, vector<16x512xf32>, vector<5x512xf32> -> vector<5x512xf32>
    %c11 = arith.constant 11 : index
    %c0_7 = arith.constant 0 : index
    %18 = vector.load %arg2[%c11, %c0_7] : memref<16x512xf32, #tpu.memory_space<vmem>>, vector<1x512xf32>
    %c12 = arith.constant 12 : index
    %c0_8 = arith.constant 0 : index
    %19 = vector.load %arg2[%c12, %c0_8] : memref<16x512xf32, #tpu.memory_space<vmem>>, vector<1x512xf32>
    %c13 = arith.constant 13 : index
    %c0_9 = arith.constant 0 : index
    %20 = vector.load %arg2[%c13, %c0_9] : memref<16x512xf32, #tpu.memory_space<vmem>>, vector<1x512xf32>
    %21 = tpu.iota {dimensions = array<i32: 1>} : vector<1x128xi32>
    %c0_i32 = arith.constant 0 : i32
    %22 = vector.broadcast %c0_i32 : i32 to vector<1x128xi32>
    %23 = arith.cmpi eq, %21, %22 : vector<1x128xi32>
    %24 = arith.extui %23 : vector<1x128xi1> to vector<1x128xi32>
    %25 = arith.sitofp %24 : vector<1x128xi32> to vector<1x128xf32>
    %c1_i32 = arith.constant 1 : i32
    %26 = vector.broadcast %c1_i32 : i32 to vector<1x128xi32>
    %27 = arith.cmpi eq, %21, %26 : vector<1x128xi32>
    %28 = arith.extui %27 : vector<1x128xi1> to vector<1x128xi32>
    %29 = arith.sitofp %28 : vector<1x128xi32> to vector<1x128xf32>
    %c2_i32 = arith.constant 2 : i32
    %30 = vector.broadcast %c2_i32 : i32 to vector<1x128xi32>
    %31 = arith.cmpi eq, %21, %30 : vector<1x128xi32>
    %32 = arith.extui %31 : vector<1x128xi1> to vector<1x128xi32>
    %33 = arith.sitofp %32 : vector<1x128xi32> to vector<1x128xf32>
    %cst_10 = arith.constant 0.000000e+00 : f32
    %34 = vector.broadcast %cst_10 : f32 to vector<1x128xf32>
    %cst_11 = arith.constant 0.000000e+00 : f32
    %35 = vector.broadcast %cst_11 : f32 to vector<1x128xf32>
    %36 = vector.extract_strided_slice %17 {offsets = [0, 0], sizes = [1, 512], strides = [1, 1]} : vector<5x512xf32> to vector<1x512xf32>
    %37 = arith.mulf %34, %25 : vector<1x128xf32>
    %cst_12 = arith.constant dense<0.000000e+00> : vector<1xf32>
    %38 = vector.multi_reduction <add>, %37, %cst_12 [1] : vector<1x128xf32> to vector<1xf32>
    %39 = vector.shape_cast %38 : vector<1xf32> to vector<1x1xf32>
    %40 = vector.broadcast %39 : vector<1x1xf32> to vector<1x512xf32>
    %41 = arith.mulf %40, %18 : vector<1x512xf32>
    %42 = arith.addf %36, %41 : vector<1x512xf32>
    %43 = arith.mulf %34, %29 : vector<1x128xf32>
    %cst_13 = arith.constant dense<0.000000e+00> : vector<1xf32>
    %44 = vector.multi_reduction <add>, %43, %cst_13 [1] : vector<1x128xf32> to vector<1xf32>
    %45 = vector.shape_cast %44 : vector<1xf32> to vector<1x1xf32>
    %46 = vector.broadcast %45 : vector<1x1xf32> to vector<1x512xf32>
    %47 = arith.mulf %46, %19 : vector<1x512xf32>
    %48 = arith.addf %42, %47 : vector<1x512xf32>
    %49 = arith.mulf %34, %33 : vector<1x128xf32>
    %cst_14 = arith.constant dense<0.000000e+00> : vector<1xf32>
    %50 = vector.multi_reduction <add>, %49, %cst_14 [1] : vector<1x128xf32> to vector<1xf32>
    %51 = vector.shape_cast %50 : vector<1xf32> to vector<1x1xf32>
    %52 = vector.broadcast %51 : vector<1x1xf32> to vector<1x512xf32>
    %53 = arith.mulf %52, %20 : vector<1x512xf32>
    %54 = arith.addf %48, %53 : vector<1x512xf32>
    %55 = vector.extract_strided_slice %54 {offsets = [0, 0], sizes = [1, 128], strides = [1, 1]} : vector<1x512xf32> to vector<1x128xf32>
    %56 = arith.negf %55 : vector<1x128xf32>
    %57 = math.exp %56 : vector<1x128xf32>
    %cst_15 = arith.constant 1.000000e+00 : f32
    %58 = vector.broadcast %cst_15 : f32 to vector<1x128xf32>
    %59 = arith.addf %58, %57 : vector<1x128xf32>
    %60 = arith.divf %58, %59 : vector<1x128xf32>
    %61 = vector.extract_strided_slice %54 {offsets = [0, 128], sizes = [1, 128], strides = [1, 1]} : vector<1x512xf32> to vector<1x128xf32>
    %62 = arith.negf %61 : vector<1x128xf32>
    %63 = math.exp %62 : vector<1x128xf32>
    %cst_16 = arith.constant 1.000000e+00 : f32
    %64 = vector.broadcast %cst_16 : f32 to vector<1x128xf32>
    %65 = arith.addf %64, %63 : vector<1x128xf32>
    %66 = arith.divf %64, %65 : vector<1x128xf32>
    %67 = vector.extract_strided_slice %54 {offsets = [0, 256], sizes = [1, 128], strides = [1, 1]} : vector<1x512xf32> to vector<1x128xf32>
    %68 = math.tanh %67 : vector<1x128xf32>
    %69 = vector.extract_strided_slice %54 {offsets = [0, 384], sizes = [1, 128], strides = [1, 1]} : vector<1x512xf32> to vector<1x128xf32>
    %70 = arith.negf %69 : vector<1x128xf32>
    %71 = math.exp %70 : vector<1x128xf32>
    %cst_17 = arith.constant 1.000000e+00 : f32
    %72 = vector.broadcast %cst_17 : f32 to vector<1x128xf32>
    %73 = arith.addf %72, %71 : vector<1x128xf32>
    %74 = arith.divf %72, %73 : vector<1x128xf32>
    %75 = arith.mulf %66, %35 : vector<1x128xf32>
    %76 = arith.mulf %60, %68 : vector<1x128xf32>
    %77 = arith.addf %75, %76 : vector<1x128xf32>
    %78 = math.tanh %77 : vector<1x128xf32>
    %79 = arith.mulf %74, %78 : vector<1x128xf32>
    %c0_18 = arith.constant 0 : index
    %c0_19 = arith.constant 0 : index
    %80 = vector.load %arg5[%c0_18, %c0_19] : memref<5x128xf32, #tpu.memory_space<vmem>>, vector<1x128xf32>
    tpu.vector_store %arg5[%c0_18, %c0_19], %79 {strides = array<i32>} : memref<5x128xf32, #tpu.memory_space<vmem>>, vector<1x128xf32>,
    %81 = vector.extract_strided_slice %17 {offsets = [1, 0], sizes = [1, 512], strides = [1, 1]} : vector<5x512xf32> to vector<1x512xf32>
    %82 = arith.mulf %79, %25 : vector<1x128xf32>
    %cst_20 = arith.constant dense<0.000000e+00> : vector<1xf32>
    %83 = vector.multi_reduction <add>, %82, %cst_20 [1] : vector<1x128xf32> to vector<1xf32>
    %84 = vector.shape_cast %83 : vector<1xf32> to vector<1x1xf32>
    %85 = vector.broadcast %84 : vector<1x1xf32> to vector<1x512xf32>
    %86 = arith.mulf %85, %18 : vector<1x512xf32>
    %87 = arith.addf %81, %86 : vector<1x512xf32>
    %88 = arith.mulf %79, %29 : vector<1x128xf32>
    %cst_21 = arith.constant dense<0.000000e+00> : vector<1xf32>
    %89 = vector.multi_reduction <add>, %88, %cst_21 [1] : vector<1x128xf32> to vector<1xf32>
    %90 = vector.shape_cast %89 : vector<1xf32> to vector<1x1xf32>
    %91 = vector.broadcast %90 : vector<1x1xf32> to vector<1x512xf32>
    %92 = arith.mulf %91, %19 : vector<1x512xf32>
    %93 = arith.addf %87, %92 : vector<1x512xf32>
    %94 = arith.mulf %79, %33 : vector<1x128xf32>
    %cst_22 = arith.constant dense<0.000000e+00> : vector<1xf32>
    %95 = vector.multi_reduction <add>, %94, %cst_22 [1] : vector<1x128xf32> to vector<1xf32>
    %96 = vector.shape_cast %95 : vector<1xf32> to vector<1x1xf32>
    %97 = vector.broadcast %96 : vector<1x1xf32> to vector<1x512xf32>
    %98 = arith.mulf %97, %20 : vector<1x512xf32>
    %99 = arith.addf %93, %98 : vector<1x512xf32>
    %100 = vector.extract_strided_slice %99 {offsets = [0, 0], sizes = [1, 128], strides = [1, 1]} : vector<1x512xf32> to vector<1x128xf32>
    %101 = arith.negf %100 : vector<1x128xf32>
    %102 = math.exp %101 : vector<1x128xf32>
    %cst_23 = arith.constant 1.000000e+00 : f32
    %103 = vector.broadcast %cst_23 : f32 to vector<1x128xf32>
    %104 = arith.addf %103, %102 : vector<1x128xf32>
    %105 = arith.divf %103, %104 : vector<1x128xf32>
    %106 = vector.extract_strided_slice %99 {offsets = [0, 128], sizes = [1, 128], strides = [1, 1]} : vector<1x512xf32> to vector<1x128xf32>
    %107 = arith.negf %106 : vector<1x128xf32>
    %108 = math.exp %107 : vector<1x128xf32>
    %cst_24 = arith.constant 1.000000e+00 : f32
    %109 = vector.broadcast %cst_24 : f32 to vector<1x128xf32>
    %110 = arith.addf %109, %108 : vector<1x128xf32>
    %111 = arith.divf %109, %110 : vector<1x128xf32>
    %112 = vector.extract_strided_slice %99 {offsets = [0, 256], sizes = [1, 128], strides = [1, 1]} : vector<1x512xf32> to vector<1x128xf32>
    %113 = math.tanh %112 : vector<1x128xf32>
    %114 = vector.extract_strided_slice %99 {offsets = [0, 384], sizes = [1, 128], strides = [1, 1]} : vector<1x512xf32> to vector<1x128xf32>
    %115 = arith.negf %114 : vector<1x128xf32>
    %116 = math.exp %115 : vector<1x128xf32>
    %cst_25 = arith.constant 1.000000e+00 : f32
    %117 = vector.broadcast %cst_25 : f32 to vector<1x128xf32>
    %118 = arith.addf %117, %116 : vector<1x128xf32>
    %119 = arith.divf %117, %118 : vector<1x128xf32>
    %120 = arith.mulf %111, %77 : vector<1x128xf32>
    %121 = arith.mulf %105, %113 : vector<1x128xf32>
    %122 = arith.addf %120, %121 : vector<1x128xf32>
    %123 = math.tanh %122 : vector<1x128xf32>
    %124 = arith.mulf %119, %123 : vector<1x128xf32>
    %c1_26 = arith.constant 1 : index
    %c0_27 = arith.constant 0 : index
    %125 = vector.load %arg5[%c1_26, %c0_27] : memref<5x128xf32, #tpu.memory_space<vmem>>, vector<1x128xf32>
    tpu.vector_store %arg5[%c1_26, %c0_27], %124 {strides = array<i32>} : memref<5x128xf32, #tpu.memory_space<vmem>>, vector<1x128xf32>,
    %126 = vector.extract_strided_slice %17 {offsets = [2, 0], sizes = [1, 512], strides = [1, 1]} : vector<5x512xf32> to vector<1x512xf32>
    %127 = arith.mulf %124, %25 : vector<1x128xf32>
    %cst_28 = arith.constant dense<0.000000e+00> : vector<1xf32>
    %128 = vector.multi_reduction <add>, %127, %cst_28 [1] : vector<1x128xf32> to vector<1xf32>
    %129 = vector.shape_cast %128 : vector<1xf32> to vector<1x1xf32>
    %130 = vector.broadcast %129 : vector<1x1xf32> to vector<1x512xf32>
    %131 = arith.mulf %130, %18 : vector<1x512xf32>
    %132 = arith.addf %126, %131 : vector<1x512xf32>
    %133 = arith.mulf %124, %29 : vector<1x128xf32>
    %cst_29 = arith.constant dense<0.000000e+00> : vector<1xf32>
    %134 = vector.multi_reduction <add>, %133, %cst_29 [1] : vector<1x128xf32> to vector<1xf32>
    %135 = vector.shape_cast %134 : vector<1xf32> to vector<1x1xf32>
    %136 = vector.broadcast %135 : vector<1x1xf32> to vector<1x512xf32>
    %137 = arith.mulf %136, %19 : vector<1x512xf32>
    %138 = arith.addf %132, %137 : vector<1x512xf32>
    %139 = arith.mulf %124, %33 : vector<1x128xf32>
    %cst_30 = arith.constant dense<0.000000e+00> : vector<1xf32>
    %140 = vector.multi_reduction <add>, %139, %cst_30 [1] : vector<1x128xf32> to vector<1xf32>
    %141 = vector.shape_cast %140 : vector<1xf32> to vector<1x1xf32>
    %142 = vector.broadcast %141 : vector<1x1xf32> to vector<1x512xf32>
    %143 = arith.mulf %142, %20 : vector<1x512xf32>
    %144 = arith.addf %138, %143 : vector<1x512xf32>
    %145 = vector.extract_strided_slice %144 {offsets = [0, 0], sizes = [1, 128], strides = [1, 1]} : vector<1x512xf32> to vector<1x128xf32>
    %146 = arith.negf %145 : vector<1x128xf32>
    %147 = math.exp %146 : vector<1x128xf32>
    %cst_31 = arith.constant 1.000000e+00 : f32
    %148 = vector.broadcast %cst_31 : f32 to vector<1x128xf32>
    %149 = arith.addf %148, %147 : vector<1x128xf32>
    %150 = arith.divf %148, %149 : vector<1x128xf32>
    %151 = vector.extract_strided_slice %144 {offsets = [0, 128], sizes = [1, 128], strides = [1, 1]} : vector<1x512xf32> to vector<1x128xf32>
    %152 = arith.negf %151 : vector<1x128xf32>
    %153 = math.exp %152 : vector<1x128xf32>
    %cst_32 = arith.constant 1.000000e+00 : f32
    %154 = vector.broadcast %cst_32 : f32 to vector<1x128xf32>
    %155 = arith.addf %154, %153 : vector<1x128xf32>
    %156 = arith.divf %154, %155 : vector<1x128xf32>
    %157 = vector.extract_strided_slice %144 {offsets = [0, 256], sizes = [1, 128], strides = [1, 1]} : vector<1x512xf32> to vector<1x128xf32>
    %158 = math.tanh %157 : vector<1x128xf32>
    %159 = vector.extract_strided_slice %144 {offsets = [0, 384], sizes = [1, 128], strides = [1, 1]} : vector<1x512xf32> to vector<1x128xf32>
    %160 = arith.negf %159 : vector<1x128xf32>
    %161 = math.exp %160 : vector<1x128xf32>
    %cst_33 = arith.constant 1.000000e+00 : f32
    %162 = vector.broadcast %cst_33 : f32 to vector<1x128xf32>
    %163 = arith.addf %162, %161 : vector<1x128xf32>
    %164 = arith.divf %162, %163 : vector<1x128xf32>
    %165 = arith.mulf %156, %122 : vector<1x128xf32>
    %166 = arith.mulf %150, %158 : vector<1x128xf32>
    %167 = arith.addf %165, %166 : vector<1x128xf32>
    %168 = math.tanh %167 : vector<1x128xf32>
    %169 = arith.mulf %164, %168 : vector<1x128xf32>
    %c2_34 = arith.constant 2 : index
    %c0_35 = arith.constant 0 : index
    %170 = vector.load %arg5[%c2_34, %c0_35] : memref<5x128xf32, #tpu.memory_space<vmem>>, vector<1x128xf32>
    tpu.vector_store %arg5[%c2_34, %c0_35], %169 {strides = array<i32>} : memref<5x128xf32, #tpu.memory_space<vmem>>, vector<1x128xf32>,
    %171 = vector.extract_strided_slice %17 {offsets = [3, 0], sizes = [1, 512], strides = [1, 1]} : vector<5x512xf32> to vector<1x512xf32>
    %172 = arith.mulf %169, %25 : vector<1x128xf32>
    %cst_36 = arith.constant dense<0.000000e+00> : vector<1xf32>
    %173 = vector.multi_reduction <add>, %172, %cst_36 [1] : vector<1x128xf32> to vector<1xf32>
    %174 = vector.shape_cast %173 : vector<1xf32> to vector<1x1xf32>
    %175 = vector.broadcast %174 : vector<1x1xf32> to vector<1x512xf32>
    %176 = arith.mulf %175, %18 : vector<1x512xf32>
    %177 = arith.addf %171, %176 : vector<1x512xf32>
    %178 = arith.mulf %169, %29 : vector<1x128xf32>
    %cst_37 = arith.constant dense<0.000000e+00> : vector<1xf32>
    %179 = vector.multi_reduction <add>, %178, %cst_37 [1] : vector<1x128xf32> to vector<1xf32>
    %180 = vector.shape_cast %179 : vector<1xf32> to vector<1x1xf32>
    %181 = vector.broadcast %180 : vector<1x1xf32> to vector<1x512xf32>
    %182 = arith.mulf %181, %19 : vector<1x512xf32>
    %183 = arith.addf %177, %182 : vector<1x512xf32>
    %184 = arith.mulf %169, %33 : vector<1x128xf32>
    %cst_38 = arith.constant dense<0.000000e+00> : vector<1xf32>
    %185 = vector.multi_reduction <add>, %184, %cst_38 [1] : vector<1x128xf32> to vector<1xf32>
    %186 = vector.shape_cast %185 : vector<1xf32> to vector<1x1xf32>
    %187 = vector.broadcast %186 : vector<1x1xf32> to vector<1x512xf32>
    %188 = arith.mulf %187, %20 : vector<1x512xf32>
    %189 = arith.addf %183, %188 : vector<1x512xf32>
    %190 = vector.extract_strided_slice %189 {offsets = [0, 0], sizes = [1, 128], strides = [1, 1]} : vector<1x512xf32> to vector<1x128xf32>
    %191 = arith.negf %190 : vector<1x128xf32>
    %192 = math.exp %191 : vector<1x128xf32>
    %cst_39 = arith.constant 1.000000e+00 : f32
    %193 = vector.broadcast %cst_39 : f32 to vector<1x128xf32>
    %194 = arith.addf %193, %192 : vector<1x128xf32>
    %195 = arith.divf %193, %194 : vector<1x128xf32>
    %196 = vector.extract_strided_slice %189 {offsets = [0, 128], sizes = [1, 128], strides = [1, 1]} : vector<1x512xf32> to vector<1x128xf32>
    %197 = arith.negf %196 : vector<1x128xf32>
    %198 = math.exp %197 : vector<1x128xf32>
    %cst_40 = arith.constant 1.000000e+00 : f32
    %199 = vector.broadcast %cst_40 : f32 to vector<1x128xf32>
    %200 = arith.addf %199, %198 : vector<1x128xf32>
    %201 = arith.divf %199, %200 : vector<1x128xf32>
    %202 = vector.extract_strided_slice %189 {offsets = [0, 256], sizes = [1, 128], strides = [1, 1]} : vector<1x512xf32> to vector<1x128xf32>
    %203 = math.tanh %202 : vector<1x128xf32>
    %204 = vector.extract_strided_slice %189 {offsets = [0, 384], sizes = [1, 128], strides = [1, 1]} : vector<1x512xf32> to vector<1x128xf32>
    %205 = arith.negf %204 : vector<1x128xf32>
    %206 = math.exp %205 : vector<1x128xf32>
    %cst_41 = arith.constant 1.000000e+00 : f32
    %207 = vector.broadcast %cst_41 : f32 to vector<1x128xf32>
    %208 = arith.addf %207, %206 : vector<1x128xf32>
    %209 = arith.divf %207, %208 : vector<1x128xf32>
    %210 = arith.mulf %201, %167 : vector<1x128xf32>
    %211 = arith.mulf %195, %203 : vector<1x128xf32>
    %212 = arith.addf %210, %211 : vector<1x128xf32>
    %213 = math.tanh %212 : vector<1x128xf32>
    %214 = arith.mulf %209, %213 : vector<1x128xf32>
    %c3_42 = arith.constant 3 : index
    %c0_43 = arith.constant 0 : index
    %215 = vector.load %arg5[%c3_42, %c0_43] : memref<5x128xf32, #tpu.memory_space<vmem>>, vector<1x128xf32>
    tpu.vector_store %arg5[%c3_42, %c0_43], %214 {strides = array<i32>} : memref<5x128xf32, #tpu.memory_space<vmem>>, vector<1x128xf32>,
    %216 = vector.extract_strided_slice %17 {offsets = [4, 0], sizes = [1, 512], strides = [1, 1]} : vector<5x512xf32> to vector<1x512xf32>
    %217 = arith.mulf %214, %25 : vector<1x128xf32>
    %cst_44 = arith.constant dense<0.000000e+00> : vector<1xf32>
    %218 = vector.multi_reduction <add>, %217, %cst_44 [1] : vector<1x128xf32> to vector<1xf32>
    %219 = vector.shape_cast %218 : vector<1xf32> to vector<1x1xf32>
    %220 = vector.broadcast %219 : vector<1x1xf32> to vector<1x512xf32>
    %221 = arith.mulf %220, %18 : vector<1x512xf32>
    %222 = arith.addf %216, %221 : vector<1x512xf32>
    %223 = arith.mulf %214, %29 : vector<1x128xf32>
    %cst_45 = arith.constant dense<0.000000e+00> : vector<1xf32>
    %224 = vector.multi_reduction <add>, %223, %cst_45 [1] : vector<1x128xf32> to vector<1xf32>
    %225 = vector.shape_cast %224 : vector<1xf32> to vector<1x1xf32>
    %226 = vector.broadcast %225 : vector<1x1xf32> to vector<1x512xf32>
    %227 = arith.mulf %226, %19 : vector<1x512xf32>
    %228 = arith.addf %222, %227 : vector<1x512xf32>
    %229 = arith.mulf %214, %33 : vector<1x128xf32>
    %cst_46 = arith.constant dense<0.000000e+00> : vector<1xf32>
    %230 = vector.multi_reduction <add>, %229, %cst_46 [1] : vector<1x128xf32> to vector<1xf32>
    %231 = vector.shape_cast %230 : vector<1xf32> to vector<1x1xf32>
    %232 = vector.broadcast %231 : vector<1x1xf32> to vector<1x512xf32>
    %233 = arith.mulf %232, %20 : vector<1x512xf32>
    %234 = arith.addf %228, %233 : vector<1x512xf32>
    %235 = vector.extract_strided_slice %234 {offsets = [0, 0], sizes = [1, 128], strides = [1, 1]} : vector<1x512xf32> to vector<1x128xf32>
    %236 = arith.negf %235 : vector<1x128xf32>
    %237 = math.exp %236 : vector<1x128xf32>
    %cst_47 = arith.constant 1.000000e+00 : f32
    %238 = vector.broadcast %cst_47 : f32 to vector<1x128xf32>
    %239 = arith.addf %238, %237 : vector<1x128xf32>
    %240 = arith.divf %238, %239 : vector<1x128xf32>
    %241 = vector.extract_strided_slice %234 {offsets = [0, 128], sizes = [1, 128], strides = [1, 1]} : vector<1x512xf32> to vector<1x128xf32>
    %242 = arith.negf %241 : vector<1x128xf32>
    %243 = math.exp %242 : vector<1x128xf32>
    %cst_48 = arith.constant 1.000000e+00 : f32
    %244 = vector.broadcast %cst_48 : f32 to vector<1x128xf32>
    %245 = arith.addf %244, %243 : vector<1x128xf32>
    %246 = arith.divf %244, %245 : vector<1x128xf32>
    %247 = vector.extract_strided_slice %234 {offsets = [0, 256], sizes = [1, 128], strides = [1, 1]} : vector<1x512xf32> to vector<1x128xf32>
    %248 = math.tanh %247 : vector<1x128xf32>
    %249 = vector.extract_strided_slice %234 {offsets = [0, 384], sizes = [1, 128], strides = [1, 1]} : vector<1x512xf32> to vector<1x128xf32>
    %250 = arith.negf %249 : vector<1x128xf32>
    %251 = math.exp %250 : vector<1x128xf32>
    %cst_49 = arith.constant 1.000000e+00 : f32
    %252 = vector.broadcast %cst_49 : f32 to vector<1x128xf32>
    %253 = arith.addf %252, %251 : vector<1x128xf32>
    %254 = arith.divf %252, %253 : vector<1x128xf32>
    %255 = arith.mulf %246, %212 : vector<1x128xf32>
    %256 = arith.mulf %240, %248 : vector<1x128xf32>
    %257 = arith.addf %255, %256 : vector<1x128xf32>
    %258 = math.tanh %257 : vector<1x128xf32>
    %259 = arith.mulf %254, %258 : vector<1x128xf32>
    %c4_50 = arith.constant 4 : index
    %c0_51 = arith.constant 0 : index
    %260 = vector.load %arg5[%c4_50, %c0_51] : memref<5x128xf32, #tpu.memory_space<vmem>>, vector<1x128xf32>
    tpu.vector_store %arg5[%c4_50, %c0_51], %259 {strides = array<i32>} : memref<5x128xf32, #tpu.memory_space<vmem>>, vector<1x128xf32>,
    %c0_52 = arith.constant 0 : index
    %c0_53 = arith.constant 0 : index
    %261 = vector.load %arg5[%c0_52, %c0_53] : memref<5x128xf32, #tpu.memory_space<vmem>>, vector<5x128xf32>
    %262 = vector.extract_strided_slice %261 {offsets = [0, 0], sizes = [5, 8], strides = [1, 1]} : vector<5x128xf32> to vector<5x8xf32>
    %263 = tpu.iota {dimensions = array<i32: 1>} : vector<1x8xi32>
    %c3_i32 = arith.constant 3 : i32
    %264 = vector.broadcast %c3_i32 : i32 to vector<1x8xi32>
    %265 = arith.cmpi eq, %263, %264 : vector<1x8xi32>
    %266 = arith.extui %265 : vector<1x8xi1> to vector<1x8xi32>
    %267 = arith.sitofp %266 : vector<1x8xi32> to vector<1x8xf32>
    %268 = vector.broadcast %267 : vector<1x8xf32> to vector<5x8xf32>
    %269 = arith.addf %262, %268 : vector<5x8xf32>
    %c0_54 = arith.constant 0 : index
    %c0_55 = arith.constant 0 : index
    %270 = vector.load %arg3[%c0_54, %c0_55] : memref<8x3xf32, #tpu.memory_space<vmem>>, vector<8x3xf32>
    %cst_56 = arith.constant dense<0.000000e+00> : vector<5x3xf32>
    %271 = tpu.matmul %269, %270, %cst_56 {dimension_numbers = #tpu.dot_dimension_numbers<[1], [0], [0], [1], [0, 0, 1, 1], [], []>} : vector<5x8xf32>, vector<8x3xf32>, vector<5x3xf32> -> vector<5x3xf32>
    %cst_57 = arith.constant dense<0xFF800000> : vector<5xf32>
    %272 = vector.multi_reduction <maximumf>, %271, %cst_57 [1] : vector<5x3xf32> to vector<5xf32>
    %273 = vector.shape_cast %272 : vector<5xf32> to vector<5x1xf32>
    %274 = vector.broadcast %273 : vector<5x1xf32> to vector<5x3xf32>
    %275 = arith.subf %271, %274 : vector<5x3xf32>
    %276 = math.exp %275 : vector<5x3xf32>
    %cst_58 = arith.constant dense<0.000000e+00> : vector<5xf32>
    %277 = vector.multi_reduction <add>, %276, %cst_58 [1] : vector<5x3xf32> to vector<5xf32>
    %278 = vector.shape_cast %277 : vector<5xf32> to vector<5x1xf32>
    %279 = math.log %278 : vector<5x1xf32>
    %280 = arith.addf %279, %273 : vector<5x1xf32>
    %281 = vector.broadcast %280 : vector<5x1xf32> to vector<5x3xf32>
    %282 = arith.subf %271, %281 : vector<5x3xf32>
    %c0_59 = arith.constant 0 : index
    %c0_60 = arith.constant 0 : index
    %283 = vector.load %arg4[%c0_59, %c0_60] : memref<5x3xf32, #tpu.memory_space<vmem>>, vector<5x3xf32>
    tpu.vector_store %arg4[%c0_59, %c0_60], %282 {strides = array<i32>} : memref<5x3xf32, #tpu.memory_space<vmem>>, vector<5x3xf32>,
    return
  }
}

</mosaic_0001>

<bundles_post_ra>
// kernel: tpu_custom_call.1
= control target key start
LH: loop header
LB: loop body
LE: loop exit
PB: predicated region body
PF: predicated region fallthrough
CT: control target
= control target key end

     0   :  { %9 = vsyncpa [#allocation5], 0  ;;  %s1428_s0 = inlined_call_operand.vmem [shape: s32[5], index: 0, kind: input, shape index: {}]   ;;  %s1429_s1 = inlined_call_operand.hbm [shape: f32[9,16], index: 1, kind: input, shape index: {}]   ;;  %s1430_s2 = inlined_call_operand.hbm [shape: f32[16,512], index: 2, kind: input, shape index: {}]   ;;  %s1431_s3 = inlined_call_operand.vmem [shape: f32[8,3], index: 3, kind: input, shape index: {}]   ;;  %s1432_s4 = inlined_call_operand.vmem [shape: f32[5,3], index: 4, kind: output, shape index: {}]  }
   0x1   :  { %10 = vsyncpa [#allocation4], 0  ;;  %s18_s17 = sshll.u32 %s1428_s0, 4  ;;  %s19_s17 = int_to_ptr.vmem [resolvable:$true] %s18_s17 }
   0x2   :  { %11 = vsyncpa [#allocation8], 0  ;;  %s1083_s18 = scalar_lea.vmem %s19_s17, 16  ;;  %p1088_p1 = scmp.lt.s32.totalorder %s19_s17, %s19_s17 }
   0x3   :  { %p1084_p0 = scmp.ne.s32.totalorder %s19_s17, %s1083_s18  ;;  %p1089_p2 = scmp.lt.s32.totalorder %s1083_s18, %s1083_s18 }
   0x5   :  { %p1090_p3 = por %p1089_p2, %p1088_p1 }
   0x7   :  { %p1091_p4 = pnand %p1090_p3, %p1084_p0 }
   0x9   :  { %1094 = shalt.err (!%p1091_p4)
}
   0xa   :  { %s1145_s19 = smov [#allocation3]   ;;  %s1146_s20 = smov [#allocation6]  }
   0xb   :  { %21 = dma.vmem_to_smem %s19_s17, 16, %s1145_s19, [#allocation5]  }
   0xc   :  { %s27_s21 = sshll.u32 %s1146_s20, 4  ;;  %s1095_s24 = scalar_lea.hbm %s1429_s1, 256  ;;  %s28_s21 = int_to_ptr.vmem [resolvable:$true] %s27_s21 }
   0xd   :  { %p1096_p5 = scmp.ne.s32.totalorder %s1429_s1, %s1095_s24  ;;  %p1099_p6 = scmp.lt.u32.totalorder %s1095_s24, %s1429_s1 }
   0xf   :  { %p1101_p7 = pnand %p1099_p6, %p1096_p5 }
  0x11   :  { %1104 = shalt.err (!%p1101_p7)
}
  0x12   :  { %s1105_s28 = scalar_lea.vmem %s28_s21, 256  ;;  %p1110_p9 = scmp.lt.s32.totalorder %s28_s21, %s28_s21 }
  0x13   :  { %p1106_p8 = scmp.ne.s32.totalorder %s28_s21, %s1105_s28  ;;  %p1111_p10 = scmp.lt.s32.totalorder %s1105_s28, %s1105_s28 }
  0x15   :  { %p1112_p11 = por %p1111_p10, %p1110_p9 }
  0x17   :  { %p1113_p12 = pnand %p1112_p11, %p1106_p8 }
  0x19   :  { %1116 = shalt.err (!%p1113_p12)
}
  0x1a   :  { %s1147_s29 = smov 128   ;;  %s1148_s30 = smov 8  }
  0x1b   :  { %33 = dma.hbm_to_vmem [thread:$0]  %s1429_s1, 256, %s28_s21, [#allocation4], %s1147_s29, %s1147_s29, %s1148_s30  }
  0x1c   :  { %s1149_s7 = smov [#allocation7]   ;;  %s1117_s11 = scalar_lea.hbm %s1430_s2, 1024 }
  0x1d   :  { %s39_s8 = sshll.u32 %s1149_s7, 4  ;;  %p1118_p13 = scmp.ne.s32.totalorder %s1430_s2, %s1117_s11  ;;  %s40_s8 = int_to_ptr.vmem [resolvable:$true] %s39_s8 }
  0x1e   :  { %p1121_p0 = scmp.lt.u32.totalorder %s1117_s11, %s1430_s2 }
  0x20   :  { %p1123_p1 = pnand %p1121_p0, %p1118_p13 }
  0x22   :  { %1126 = shalt.err (!%p1123_p1)
}
  0x23   :  { %s1127_s16 = scalar_lea.vmem %s40_s8, 1024  ;;  %p1132_p3 = scmp.lt.s32.totalorder %s40_s8, %s40_s8 }
  0x24   :  { %p1128_p2 = scmp.ne.s32.totalorder %s40_s8, %s1127_s16  ;;  %p1133_p4 = scmp.lt.s32.totalorder %s1127_s16, %s1127_s16 }
  0x26   :  { %p1134_p5 = por %p1133_p4, %p1132_p3 }
  0x28   :  { %p1135_p6 = pnand %p1134_p5, %p1128_p2 }
  0x2a   :  { %1138 = shalt.err (!%p1135_p6)
}
  0x2b   :  { %s1150_s1 = smov 512   ;;  %s1151_s17 = smov 32  }
  0x2c   :  { %45 = dma.hbm_to_vmem [thread:$0]  %s1430_s2, 1024, %s40_s8, [#allocation8], %s1150_s1, %s1150_s1, %s1151_s17  }
  0x2d   :  { %1139 = dma.done.wait [#allocation5], 16  }
  0x2e   :  { %1140 = vsyncadd [#allocation5], 4294967280 }
  0x2f   :  { %1141 = dma.done.wait [#allocation4], 256  }
  0x30   :  { %1142 = vsyncadd [#allocation4], 4294967040 }
  0x31   :  { %1143 = dma.done.wait [#allocation8], 1024  }
  0x32   :  { %1144 = vsyncadd [#allocation8], 4294966272 }
  0x33   :  { %57 = sfence }
  0x34   :  { %v94_v0 = vld [vmem:[#allocation7 + $0x8] sm:$0xff]  ;;  %v96_v2 = vld [vmem:[#allocation7 + $0x18] sm:$0xff]  ;;  %s1206_s20 = sld [smem:[#allocation3]]  ;;  %v253_v3 = vlaneseq  ;;  %v93_v6 = vld [vmem:[#allocation7] sm:$0xff]  ;;  %v1152_v8 = vmov 0.0   ;;  %s949_s2 = sld [smem:[#allocation3 + $0x1]] }
  0x35   :  { %v98_v1 = vld [vmem:[#allocation7 + $0x28] sm:$0xff]  ;;  %v100_v5 = vld [vmem:[#allocation7 + $0x38] sm:$0xff]  ;;  %v97_v7 = vld [vmem:[#allocation7 + $0x20] sm:$0xff]  ;;  %169 = vmatprep.mubr.f32.mxu0 %v1152_v8  ;;  %240 = vmatprep.mubr.f32.mxu1 %v1152_v8  ;;  %s950_s21 = sld [smem:[#allocation3 + $0x2]]  ;;  %s951_s22 = sld [smem:[#allocation3 + $0x3]]  ;;  %vm85_vm0 = vcmask 1040384  }
  0x36   :  { %v982_v4 = vpack.c.bf16 %v98_v1, %v94_v0  ;;  %v986_v9 = vpack.c.bf16 %v100_v5, %v96_v2  ;;  %v984_v10 = vpack.c.bf16 %v97_v7, %v93_v6  ;;  %v95_v11 = vld [vmem:[#allocation7 + $0x10] sm:$0xff]  ;;  %s952_s23 = sld [smem:[#allocation3 + $0x4]]  ;;  %v1210_v14 = vand.u32 127, %v253_v3 }
  0x37   :  { %v99_v12 = vld [vmem:[#allocation7 + $0x30] sm:$0xff]  ;;  %vm87_vm1 = vcmask 1041408   ;;  %vm89_vm5 = vcmask 1042432   ;;  %vm91_vm6 = vcmask 1043456   ;;  %vm101_vm7 = vcmask 130048  }
  0x38   :  { %983 = vmatprep.subr.bf16.mxu0 %v982_v4  ;;  %v988_v13 = vpack.c.bf16 %v99_v12, %v95_v11  ;;  %987 = vmatprep.subr.bf16.mxu1 %v986_v9  ;;  %vm255_vm2 = vcmp.eq.s32.totalorder %v1210_v14, 0  ;;  %vm258_vm3 = vcmp.eq.s32.totalorder %v1210_v14, 1  ;;  %vm261_vm4 = vcmp.eq.s32.totalorder %v1210_v14, 2  ;;  %v1232_v36 = vld [vmem:[#allocation7 + $0x23] ss:$8 sm:$0xf] }
  0x39   :  { %985 = vmatpush1.bf16.msra.mxu0 %v984_v10  ;;  %v1218_v16 = vsel %vm255_vm2, 1.0, %v1152_v8  ;;  %v1221_v17 = vsel %vm258_vm3, 1.0, %v1152_v8  ;;  %v1224_v18 = vsel %vm261_vm4, 1.0, %v1152_v8  ;;  %v270_v35 = vshrl.u32 %v253_v3, 7 }
  0x3a   :  { %989 = vmatpush1.bf16.msra.mxu1 %v988_v13  ;;  %977 = vmatprep.subr.mxu0 %v1152_v8  ;;  %s59_s24 = scalar_lea.vmem [#allocation6], %s1206_s20  ;;  %s62_s25 = scalar_lea.vmem [#allocation6], %s949_s2  ;;  %v264_v20 = vmul.f32 0.0, %v1218_v16  ;;  %v293_v27 = vmul.f32 0.0, %v1221_v17  ;;  %v322_v28 = vmul.f32 0.0, %v1224_v18  ;;  %vm540_vm8 = vcmask 1041409  }
  0x3b   :  { %v60_v15 = vld [vmem:[%s59_s24] sm:$0x1]  ;;  %s65_s0 = scalar_lea.vmem [#allocation6], %s950_s21  ;;  %s68_s26 = scalar_lea.vmem [#allocation6], %s951_s22  ;;  %v1236_v39 = vsub.s32 0, %v270_v35  ;;  %v1242_v44 = vsub.s32 1, %v270_v35 }
  0x3c   :  { %v63_v19 = vld [vmem:[%s62_s25] sm:$0x1]  ;;  %s71_s27 = scalar_lea.vmem [#allocation6], %s952_s23  ;;  %265 = vadd.xlane.f32.xlu0 %v264_v20  ;;  %323 = vadd.xlane.f32.xlu1 %v322_v28  ;;  %v1234_v37 = vld [vmem:[#allocation7 + $0x24] ss:$8 sm:$0xf] }
  0x3d   :  { %v66_v21 = vld [vmem:[%s65_s0] sm:$0x1]  ;;  %v74_v23 = vrot.slane %v63_v19, 7  ;;  %v1239_v41 = vld [vmem:[#allocation7 + $0x25] ss:$8 sm:$0xf] }
  0x3e   :  { %v69_v22 = vld [vmem:[%s68_s26] sm:$0x1]  ;;  %v77_v25 = vrot.slane %v66_v21, 6  ;;  %v1246_v47 = vsub.s32 3, %v270_v35  ;;  %v1255_v53 = vsub.s32 2, %v270_v35  ;;  %vm641_vm9 = vcmask 1042434  }
  0x3f   :  { %v72_v24 = vld [vmem:[%s71_s27] sm:$0x1]  ;;  %v80_v26 = vrot.slane %v69_v22, 5  ;;  %v86_v30 = vsel %vm85_vm0, %v60_v15, %v74_v23  ;;  %vm742_vm10 = vcmask 1043459   ;;  %vm1153_vm11 = vmmov 0  }
  0x40   :  { %v83_v29 = vrot.slane %v72_v24, 4  ;;  %v88_v31 = vsel %vm87_vm1, %v86_v30, %v77_v25  ;;  %294 = vadd.xlane.f32.xlu0 %v293_v27  ;;  %vm843_vm12 = vcmp.eq.s32.totalorder %v1210_v14, 3  ;;  %vm848_vm13 = vcmask 64512  }
  0x41   :  { %v90_v32 = vsel %vm89_vm5, %v88_v31, %v80_v26  ;;  %vm922_vm14 = vcmask 20480  }
  0x42   :  { %v92_v33 = vsel %vm91_vm6, %v90_v32, %v83_v29 }
  0x43   :  { %953 = vmatmul.mubr.msk.f32.vlgmr.msra.gmra.mrb[0].mxu0 %vm101_vm7, %v92_v33  ;;  %954 = vmatmul.mubr.msk.f32.vlgmr.msra.gmra.mrb[0].mxu1 %vm101_vm7, %v92_v33 }
  0x44   :  { %979 = vmatprep.mubr.msk.f32.mxu0 %vm1153_vm11, %v1152_v8 }
  0xc9   :  { %v266_v34 = vpop.xlane.xlu0 %265  ;;  %v324_v42 = vpop.xlane.xlu1 %323 }
  0xca   :  { %v267_v40 = vmul.f32 %v266_v34, %v1232_v36  ;;  %v325_v46 = vmul.f32 %v324_v42, %v1239_v41 }
  0xcc   :  { %v272_v45 = vrot.slane %v267_v40, %v1236_v39  ;;  %v276_v49 = vrot.slane %v267_v40, %v1242_v44  ;;  %v330_v54 = vrot.slane %v325_v46, %v1236_v39  ;;  %v334_v58 = vrot.slane %v325_v46, %v1242_v44 }
  0xcd   :  { %v295_v38 = vpop.xlane.xlu0 %294  ;;  %v284_v60 = vrot.slane %v267_v40, %v1246_v47  ;;  %v280_v1 = vrot.slane %v267_v40, %v1255_v53  ;;  %v342_v5 = vrot.slane %v325_v46, %v1246_v47  ;;  %v338_v12 = vrot.slane %v325_v46, %v1255_v53 }
  0xce   :  { %v296_v43 = vmul.f32 %v295_v38, %v1234_v37  ;;  %v1284_v46 = vrot.slane %v1234_v37, %v1236_v39 }
  0xd0   :  { %v301_v48 = vrot.slane %v296_v43, %v1236_v39  ;;  %v305_v50 = vrot.slane %v296_v43, %v1242_v44  ;;  %v313_v62 = vrot.slane %v296_v43, %v1246_v47  ;;  %v309_v9 = vrot.slane %v296_v43, %v1255_v53 }
 0x116   :  { %v1251_v51 = vpop.f32.mrb[0].mxu0  ;;  %v1253_v52 = vpop.f32.mrb[0].mxu1 }
 0x117   :  { %v289_v55 = vadd.f32 %v272_v45, %v1251_v51  ;;  %v1259_v56 = vpop.f32.mrb[1].mxu0  ;;  %v1261_v57 = vpop.f32.mrb[1].mxu1  ;;  %v291_v10 = vadd.f32 %v280_v1, %v1253_v52 }
 0x118   :  { %v290_v59 = vadd.f32 %v276_v49, %v1259_v56  ;;  %v292_v0 = vadd.f32 %v284_v60, %v1261_v57  ;;  %v1292_v49 = vrot.slane %v1232_v36, %v1242_v44  ;;  %v1308_v60 = vrot.slane %v1239_v41, %v1236_v39 }
 0x119   :  { %v318_v61 = vadd.f32 %v301_v48, %v289_v55  ;;  %v320_v13 = vadd.f32 %v309_v9, %v291_v10  ;;  %v1288_v48 = vrot.slane %v1232_v36, %v1236_v39  ;;  %v1325_v39 = vrot.slane %v1239_v41, %v1246_v47 }
 0x11a   :  { %v319_v63 = vadd.f32 %v305_v50, %v290_v59  ;;  %v321_v7 = vadd.f32 %v313_v62, %v292_v0  ;;  %v1296_v50 = vrot.slane %v1232_v36, %v1246_v47  ;;  %v1304_v59 = vrot.slane %v1232_v36, %v1255_v53 }
 0x11b   :  { %v347_v2 = vadd.f32 %v330_v54, %v318_v61  ;;  %v349_v19 = vadd.f32 %v338_v12, %v320_v13  ;;  %v1300_v54 = vrot.slane %v1234_v37, %v1242_v44  ;;  %v1312_v61 = vrot.slane %v1239_v41, %v1242_v44 }
 0x11c   :  { %v348_v3 = vadd.f32 %v334_v58, %v319_v63  ;;  %v350_v11 = vadd.f32 %v342_v5, %v321_v7  ;;  %v1321_v36 = vrot.slane %v1234_v37, %v1246_v47 }
 0x11d   :  { %v958_v4 = vmul.f32 -1.442695, %v347_v2 }
 0x11e   :  { %v959_v6 = vmul.f32 -1.442695, %v348_v3  ;;  %v960_v15 = vmul.f32 -1.442695, %v350_v11 }
 0x11f   :  { %999 = vpow2.f32 %v958_v4 }
 0x120   :  { %1001 = vpow2.f32 %v959_v6 }
 0x121   :  { %1003 = vpow2.f32 %v960_v15 }
 0x122   :  { %1005 = vtanh.f32 %v349_v19 }
 0x129   :  { %v1000_v20 = vpop.eup %999 }
 0x12a   :  { %v1002_v21 = vpop.eup %1001  ;;  %v354_v22 = vadd.f32 1.0, %v1000_v20  ;;  %v1335_v20 = vrot.slane %v1234_v37, %v1255_v53 }
 0x12b   :  { %v360_v23 = vadd.f32 1.0, %v1002_v21  ;;  %v1004_v24 = vpop.eup %1003 }
 0x12c   :  { %1007 = vrcp.f32 %v354_v22  ;;  %v1006_v25 = vpop.eup %1005  ;;  %v367_v29 = vadd.f32 1.0, %v1004_v24 }
 0x12d   :  { %1009 = vrcp.f32 %v360_v23 }
 0x12e   :  { %1011 = vrcp.f32 %v367_v29 }
 0x136   :  { %v1008_v26 = vpop.eup %1007 }
 0x137   :  { %v1010_v27 = vpop.eup %1009  ;;  %v371_v28 = vmul.f32 %v1008_v26, %v1006_v25  ;;  %v1341_v25 = vrot.slane %v1239_v41, %v1255_v53 }
 0x138   :  { %v370_v30 = vmul.f32 0.0, %v1010_v27  ;;  %v1012_v32 = vpop.eup %1011 }
 0x13a   :  { %v1273_v31 = vadd.f32 %v371_v28, %v370_v30 }
 0x13c   :  { %1013 = vtanh.f32 %v1273_v31 }
 0x146   :  { %v1014_v33 = vpop.eup %1013 }
 0x147   :  { %v374_v34 = vmul.f32 %v1014_v33, %v1012_v32 }
 0x149   :  { %v421_v35 = vmul.f32 %v1221_v17, %v374_v34  ;;  %375 = vst [vmem:[#allocation2] sm:$0x1] %v374_v34  ;;  %v376_v38 = vmul.f32 %v1218_v16, %v374_v34  ;;  %v466_v43 = vmul.f32 %v1224_v18, %v374_v34 }
 0x14b   :  { %v422_v40 = vsel %vm85_vm0, %v421_v35, 0.0  ;;  %v377_v42 = vsel %vm85_vm0, %v376_v38, 0.0  ;;  %v467_v45 = vsel %vm85_vm0, %v466_v43, 0.0 }
 0x14c   :  { %423 = vadd.xlane.f32.xlu0 %v422_v40  ;;  %378 = vadd.xlane.f32.xlu1 %v377_v42 }
 0x150   :  { %468 = vadd.xlane.f32.xlu1 %v467_v45 }
 0x1d9   :  { %v424_v55 = vpop.xlane.xlu0 %423  ;;  %v379_v58 = vpop.xlane.xlu1 %378 }
 0x1da   :  { %v446_v62 = vmul.f32 %v1284_v46, %v424_v55  ;;  %v447_v63 = vmul.f32 %v1300_v54, %v424_v55  ;;  %v401_v0 = vmul.f32 %v1288_v48, %v379_v58  ;;  %v402_v1 = vmul.f32 %v1292_v49, %v379_v58 }
 0x1db   :  { %v404_v2 = vmul.f32 %v1296_v50, %v379_v58  ;;  %v403_v5 = vmul.f32 %v1304_v59, %v379_v58  ;;  %v449_v15 = vmul.f32 %v1321_v36, %v424_v55  ;;  %v448_v30 = vmul.f32 %v1335_v20, %v424_v55 }
 0x1dc   :  { %v409_v44 = vrot.slane %v401_v0, 7  ;;  %v410_v3 = vrot.slane %v402_v1, 7  ;;  %v454_v10 = vrot.slane %v446_v62, 7  ;;  %v455_v11 = vrot.slane %v447_v63, 7 }
 0x1dd   :  { %v469_v4 = vpop.xlane.xlu1 %468  ;;  %v412_v6 = vrot.slane %v404_v2, 7  ;;  %v411_v26 = vrot.slane %v403_v5, 7  ;;  %v457_v29 = vrot.slane %v449_v15, 7  ;;  %v456_v40 = vrot.slane %v448_v30, 7 }
 0x1de   :  { %v491_v7 = vmul.f32 %v1308_v60, %v469_v4  ;;  %v492_v9 = vmul.f32 %v1312_v61, %v469_v4  ;;  %v417_v12 = vadd.f32 %v409_v44, %v1251_v51  ;;  %v418_v13 = vadd.f32 %v410_v3, %v1259_v56 }
 0x1df   :  { %v420_v23 = vadd.f32 %v412_v6, %v1261_v57  ;;  %v494_v24 = vmul.f32 %v1325_v39, %v469_v4  ;;  %v419_v35 = vadd.f32 %v411_v26, %v1253_v52  ;;  %v493_v38 = vmul.f32 %v1341_v25, %v469_v4 }
 0x1e0   :  { %v499_v47 = vrot.slane %v491_v7, 7  ;;  %v500_v19 = vrot.slane %v492_v9, 7  ;;  %v462_v21 = vadd.f32 %v454_v10, %v417_v12  ;;  %v463_v22 = vadd.f32 %v455_v11, %v418_v13 }
 0x1e1   :  { %v465_v37 = vadd.f32 %v457_v29, %v420_v23  ;;  %v502_v34 = vrot.slane %v494_v24, 7  ;;  %v464_v41 = vadd.f32 %v456_v40, %v419_v35  ;;  %v501_v53 = vrot.slane %v493_v38, 7 }
 0x1e2   :  { %v507_v27 = vadd.f32 %v499_v47, %v462_v21  ;;  %v508_v28 = vadd.f32 %v500_v19, %v463_v22  ;;  %v531_v44 = vrot.slane %v1273_v31, 7 }
 0x1e3   :  { %v510_v42 = vadd.f32 %v502_v34, %v465_v37  ;;  %v509_v45 = vadd.f32 %v501_v53, %v464_v41 }
 0x1e4   :  { %v961_v32 = vmul.f32 -1.442695, %v507_v27  ;;  %v962_v33 = vmul.f32 -1.442695, %v508_v28 }
 0x1e5   :  { %v963_v43 = vmul.f32 -1.442695, %v510_v42 }
 0x1e6   :  { %1015 = vpow2.f32 %v961_v32 }
 0x1e7   :  { %1017 = vpow2.f32 %v962_v33 }
 0x1e8   :  { %1019 = vpow2.f32 %v963_v43 }
 0x1e9   :  { %1021 = vtanh.f32 %v509_v45 }
 0x1f0   :  { %v1016_v58 = vpop.eup %1015 }
 0x1f1   :  { %v1018_v62 = vpop.eup %1017  ;;  %v514_v63 = vadd.f32 1.0, %v1016_v58 }
 0x1f2   :  { %v520_v55 = vadd.f32 1.0, %v1018_v62  ;;  %v1020_v0 = vpop.eup %1019 }
 0x1f3   :  { %1023 = vrcp.f32 %v514_v63  ;;  %v1022_v1 = vpop.eup %1021  ;;  %v527_v4 = vadd.f32 1.0, %v1020_v0 }
 0x1f4   :  { %1025 = vrcp.f32 %v520_v55 }
 0x1f5   :  { %1027 = vrcp.f32 %v527_v4 }
 0x1fd   :  { %v1024_v2 = vpop.eup %1023 }
 0x1fe   :  { %v1026_v3 = vpop.eup %1025  ;;  %v534_v5 = vmul.f32 %v1024_v2, %v1022_v1 }
 0x1ff   :  { %v533_v6 = vmul.f32 %v1026_v3, %v531_v44  ;;  %v1028_v9 = vpop.eup %1027 }
 0x201   :  { %v1347_v7 = vadd.f32 %v534_v5, %v533_v6 }
 0x203   :  { %1029 = vtanh.f32 %v1347_v7 }
 0x20d   :  { %v1030_v10 = vpop.eup %1029 }
 0x20e   :  { %v537_v11 = vmul.f32 %v1030_v10, %v1028_v9 }
 0x210   :  { %v564_v12 = vmul.f32 %v1221_v17, %v537_v11  ;;  %538 = vst [vmem:[#allocation2] sm:$0x2] %v537_v11  ;;  %v539_v13 = vmul.f32 %v1218_v16, %v537_v11  ;;  %v588_v47 = vmul.f32 %v1224_v18, %v537_v11 }
 0x212   :  { %v565_v15 = vsel %vm540_vm8, %v564_v12, 0.0  ;;  %v541_v31 = vsel %vm540_vm8, %v539_v13, 0.0  ;;  %v589_v19 = vsel %vm540_vm8, %v588_v47, 0.0 }
 0x213   :  { %566 = vadd.xlane.f32.xlu1 %v565_v15  ;;  %542 = vadd.xlane.f32.xlu0 %v541_v31 }
 0x217   :  { %590 = vadd.xlane.f32.xlu0 %v589_v19 }
 0x2a0   :  { %v567_v21 = vpop.xlane.xlu1 %566  ;;  %v543_v22 = vpop.xlane.xlu0 %542 }
 0x2a1   :  { %v568_v23 = vmul.f32 %v567_v21, %v1284_v46  ;;  %v569_v24 = vmul.f32 %v567_v21, %v1300_v54  ;;  %v544_v26 = vmul.f32 %v543_v22, %v1288_v48  ;;  %v545_v27 = vmul.f32 %v543_v22, %v1292_v49 }
 0x2a2   :  { %v547_v28 = vmul.f32 %v543_v22, %v1296_v50  ;;  %v546_v33 = vmul.f32 %v543_v22, %v1304_v59  ;;  %v571_v53 = vmul.f32 %v567_v21, %v1321_v36  ;;  %v570_v3 = vmul.f32 %v567_v21, %v1335_v20 }
 0x2a3   :  { %v552_v29 = vrot.slane %v544_v26, 7  ;;  %v553_v30 = vrot.slane %v545_v27, 7  ;;  %v576_v38 = vrot.slane %v568_v23, 7  ;;  %v577_v40 = vrot.slane %v569_v24, 7 }
 0x2a4   :  { %v591_v32 = vpop.xlane.xlu0 %590  ;;  %v555_v37 = vrot.slane %v547_v28, 7  ;;  %v554_v0 = vrot.slane %v546_v33, 7  ;;  %v579_v44 = vrot.slane %v571_v53, 7  ;;  %v578_v12 = vrot.slane %v570_v3, 7 }
 0x2a5   :  { %v592_v34 = vmul.f32 %v591_v32, %v1308_v60  ;;  %v593_v35 = vmul.f32 %v591_v32, %v1312_v61  ;;  %v560_v42 = vadd.f32 %v552_v29, %v1251_v51  ;;  %v561_v41 = vadd.f32 %v553_v30, %v1259_v56 }
 0x2a6   :  { %v563_v63 = vadd.f32 %v555_v37, %v1261_v57  ;;  %v595_v55 = vmul.f32 %v591_v32, %v1325_v39  ;;  %v562_v10 = vadd.f32 %v554_v0, %v1253_v52  ;;  %v594_v11 = vmul.f32 %v591_v32, %v1341_v25 }
 0x2a7   :  { %v600_v43 = vrot.slane %v592_v34, 7  ;;  %v601_v45 = vrot.slane %v593_v35, 7  ;;  %v584_v58 = vadd.f32 %v576_v38, %v560_v42  ;;  %v585_v62 = vadd.f32 %v577_v40, %v561_v41 }
 0x2a8   :  { %v587_v6 = vadd.f32 %v579_v44, %v563_v63  ;;  %v603_v9 = vrot.slane %v595_v55, 7  ;;  %v586_v15 = vadd.f32 %v578_v12, %v562_v10  ;;  %v602_v31 = vrot.slane %v594_v11, 7 }
 0x2a9   :  { %v608_v1 = vadd.f32 %v600_v43, %v584_v58  ;;  %v609_v2 = vadd.f32 %v601_v45, %v585_v62  ;;  %v632_v29 = vrot.slane %v1347_v7, 7 }
 0x2aa   :  { %v611_v13 = vadd.f32 %v603_v9, %v587_v6  ;;  %v610_v19 = vadd.f32 %v602_v31, %v586_v15 }
 0x2ab   :  { %v964_v4 = vmul.f32 -1.442695, %v608_v1  ;;  %v965_v5 = vmul.f32 -1.442695, %v609_v2 }
 0x2ac   :  { %v966_v47 = vmul.f32 -1.442695, %v611_v13 }
 0x2ad   :  { %1031 = vpow2.f32 %v964_v4 }
 0x2ae   :  { %1033 = vpow2.f32 %v965_v5 }
 0x2af   :  { %1035 = vpow2.f32 %v966_v47 }
 0x2b0   :  { %1037 = vtanh.f32 %v610_v19 }
 0x2b7   :  { %v1032_v22 = vpop.eup %1031 }
 0x2b8   :  { %v1034_v23 = vpop.eup %1033  ;;  %v615_v24 = vadd.f32 1.0, %v1032_v22 }
 0x2b9   :  { %v621_v21 = vadd.f32 1.0, %v1034_v23  ;;  %v1036_v26 = vpop.eup %1035 }
 0x2ba   :  { %1039 = vrcp.f32 %v615_v24  ;;  %v1038_v27 = vpop.eup %1037  ;;  %v628_v32 = vadd.f32 1.0, %v1036_v26 }
 0x2bb   :  { %1041 = vrcp.f32 %v621_v21 }
 0x2bc   :  { %1043 = vrcp.f32 %v628_v32 }
 0x2c4   :  { %v1040_v28 = vpop.eup %1039 }
 0x2c5   :  { %v1042_v30 = vpop.eup %1041  ;;  %v635_v33 = vmul.f32 %v1040_v28, %v1038_v27 }
 0x2c6   :  { %v634_v37 = vmul.f32 %v1042_v30, %v632_v29  ;;  %v1044_v35 = vpop.eup %1043 }
 0x2c8   :  { %v1370_v34 = vadd.f32 %v635_v33, %v634_v37 }
 0x2ca   :  { %1045 = vtanh.f32 %v1370_v34 }
 0x2d4   :  { %v1046_v38 = vpop.eup %1045 }
 0x2d5   :  { %v638_v40 = vmul.f32 %v1046_v38, %v1044_v35 }
 0x2d7   :  { %v665_v42 = vmul.f32 %v1221_v17, %v638_v40  ;;  %639 = vst [vmem:[#allocation2] sm:$0x4] %v638_v40  ;;  %v640_v41 = vmul.f32 %v1218_v16, %v638_v40  ;;  %v689_v43 = vmul.f32 %v1224_v18, %v638_v40 }
 0x2d9   :  { %v666_v53 = vsel %vm641_vm9, %v665_v42, 0.0  ;;  %v642_v7 = vsel %vm641_vm9, %v640_v41, 0.0  ;;  %v690_v45 = vsel %vm641_vm9, %v689_v43, 0.0 }
 0x2da   :  { %667 = vadd.xlane.f32.xlu0 %v666_v53  ;;  %643 = vadd.xlane.f32.xlu1 %v642_v7 }
 0x2de   :  { %691 = vadd.xlane.f32.xlu1 %v690_v45 }
 0x367   :  { %v668_v58 = vpop.xlane.xlu0 %667  ;;  %v644_v62 = vpop.xlane.xlu1 %643 }
 0x368   :  { %v669_v63 = vmul.f32 %v668_v58, %v1284_v46  ;;  %v670_v55 = vmul.f32 %v668_v58, %v1300_v54  ;;  %v645_v0 = vmul.f32 %v644_v62, %v1288_v48  ;;  %v646_v1 = vmul.f32 %v644_v62, %v1292_v49 }
 0x369   :  { %v648_v2 = vmul.f32 %v644_v62, %v1296_v50  ;;  %v647_v5 = vmul.f32 %v644_v62, %v1304_v59  ;;  %v672_v31 = vmul.f32 %v668_v58, %v1321_v36  ;;  %v671_v30 = vmul.f32 %v668_v58, %v1335_v20 }
 0x36a   :  { %v653_v44 = vrot.slane %v645_v0, 7  ;;  %v654_v3 = vrot.slane %v646_v1, 7  ;;  %v677_v11 = vrot.slane %v669_v63, 7  ;;  %v678_v12 = vrot.slane %v670_v55, 7 }
 0x36b   :  { %v692_v4 = vpop.xlane.xlu1 %691  ;;  %v656_v6 = vrot.slane %v648_v2, 7  ;;  %v655_v26 = vrot.slane %v647_v5, 7  ;;  %v680_v29 = vrot.slane %v672_v31, 7  ;;  %v679_v42 = vrot.slane %v671_v30, 7 }
 0x36c   :  { %v693_v9 = vmul.f32 %v692_v4, %v1308_v60  ;;  %v694_v10 = vmul.f32 %v692_v4, %v1312_v61  ;;  %v661_v13 = vadd.f32 %v653_v44, %v1251_v51  ;;  %v662_v15 = vadd.f32 %v654_v3, %v1259_v56 }
 0x36d   :  { %v664_v24 = vadd.f32 %v656_v6, %v1261_v57  ;;  %v696_v21 = vmul.f32 %v692_v4, %v1325_v39  ;;  %v663_v38 = vadd.f32 %v655_v26, %v1253_v52  ;;  %v695_v40 = vmul.f32 %v692_v4, %v1341_v25 }
 0x36e   :  { %v701_v47 = vrot.slane %v693_v9, 7  ;;  %v702_v19 = vrot.slane %v694_v10, 7  ;;  %v685_v22 = vadd.f32 %v677_v11, %v661_v13  ;;  %v686_v23 = vadd.f32 %v678_v12, %v662_v15 }
 0x36f   :  { %v688_v37 = vadd.f32 %v680_v29, %v664_v24  ;;  %v704_v35 = vrot.slane %v696_v21, 7  ;;  %v687_v53 = vadd.f32 %v679_v42, %v663_v38  ;;  %v703_v7 = vrot.slane %v695_v40, 7 }
 0x370   :  { %v709_v27 = vadd.f32 %v701_v47, %v685_v22  ;;  %v710_v28 = vadd.f32 %v702_v19, %v686_v23  ;;  %v733_v44 = vrot.slane %v1370_v34, 7  ;;  %v847_v22 = vld [vmem:[%s1431_s3] sm:$0xff] }
 0x371   :  { %v712_v41 = vadd.f32 %v704_v35, %v688_v37  ;;  %v711_v45 = vadd.f32 %v703_v7, %v687_v53  ;;  %978 = vmatpush3.msra.mxu0 %v847_v22 }
 0x372   :  { %v967_v32 = vmul.f32 -1.442695, %v709_v27  ;;  %v968_v33 = vmul.f32 -1.442695, %v710_v28 }
 0x373   :  { %v969_v43 = vmul.f32 -1.442695, %v712_v41 }
 0x374   :  { %1047 = vpow2.f32 %v967_v32 }
 0x375   :  { %1049 = vpow2.f32 %v968_v33 }
 0x376   :  { %1051 = vpow2.f32 %v969_v43 }
 0x377   :  { %1053 = vtanh.f32 %v711_v45 }
 0x37e   :  { %v1048_v62 = vpop.eup %1047 }
 0x37f   :  { %v1050_v63 = vpop.eup %1049  ;;  %v716_v55 = vadd.f32 1.0, %v1048_v62 }
 0x380   :  { %v722_v58 = vadd.f32 1.0, %v1050_v63  ;;  %v1052_v0 = vpop.eup %1051 }
 0x381   :  { %1055 = vrcp.f32 %v716_v55  ;;  %v1054_v1 = vpop.eup %1053  ;;  %v729_v4 = vadd.f32 1.0, %v1052_v0 }
 0x382   :  { %1057 = vrcp.f32 %v722_v58 }
 0x383   :  { %1059 = vrcp.f32 %v729_v4 }
 0x38b   :  { %v1056_v2 = vpop.eup %1055 }
 0x38c   :  { %v1058_v3 = vpop.eup %1057  ;;  %v736_v5 = vmul.f32 %v1056_v2, %v1054_v1 }
 0x38d   :  { %v735_v6 = vmul.f32 %v1058_v3, %v733_v44  ;;  %v1060_v10 = vpop.eup %1059 }
 0x38f   :  { %v1393_v9 = vadd.f32 %v736_v5, %v735_v6 }
 0x391   :  { %1061 = vtanh.f32 %v1393_v9 }
 0x39b   :  { %v1062_v11 = vpop.eup %1061 }
 0x39c   :  { %v739_v12 = vmul.f32 %v1062_v11, %v1060_v10 }
 0x39e   :  { %v766_v13 = vmul.f32 %v1221_v17, %v739_v12  ;;  %740 = vst [vmem:[#allocation2] sm:$0x8] %v739_v12  ;;  %v741_v15 = vmul.f32 %v1218_v16, %v739_v12  ;;  %v790_v47 = vmul.f32 %v1224_v18, %v739_v12 }
 0x3a0   :  { %v767_v31 = vsel %vm742_vm10, %v766_v13, 0.0  ;;  %v743_v34 = vsel %vm742_vm10, %v741_v15, 0.0  ;;  %v791_v19 = vsel %vm742_vm10, %v790_v47, 0.0  ;;  %v973_v47 = vsel %vm843_vm12, 1.0, %v1152_v8 }
 0x3a1   :  { %768 = vadd.xlane.f32.xlu1 %v767_v31  ;;  %744 = vadd.xlane.f32.xlu0 %v743_v34 }
 0x3a5   :  { %792 = vadd.xlane.f32.xlu0 %v791_v19 }
 0x42e   :  { %v769_v17 = vpop.xlane.xlu1 %768  ;;  %v745_v23 = vpop.xlane.xlu0 %744 }
 0x42f   :  { %v770_v16 = vmul.f32 %v769_v17, %v1284_v46  ;;  %v771_v24 = vmul.f32 %v769_v17, %v1300_v54  ;;  %v746_v18 = vmul.f32 %v745_v23, %v1288_v48  ;;  %v747_v21 = vmul.f32 %v745_v23, %v1292_v49 }
 0x430   :  { %v749_v26 = vmul.f32 %v745_v23, %v1296_v50  ;;  %v748_v30 = vmul.f32 %v745_v23, %v1304_v59  ;;  %v773_v49 = vmul.f32 %v769_v17, %v1321_v36  ;;  %v772_v43 = vmul.f32 %v769_v17, %v1335_v20 }
 0x431   :  { %v754_v27 = vrot.slane %v746_v18, 7  ;;  %v755_v28 = vrot.slane %v747_v21, 7  ;;  %v778_v35 = vrot.slane %v770_v16, 7  ;;  %v779_v46 = vrot.slane %v771_v24, 7 }
 0x432   :  { %v793_v29 = vpop.xlane.xlu0 %792  ;;  %v757_v32 = vrot.slane %v749_v26, 7  ;;  %v756_v53 = vrot.slane %v748_v30, 7  ;;  %v780_v55 = vrot.slane %v772_v43, 7 }
 0x433   :  { %v794_v33 = vmul.f32 %v793_v29, %v1308_v60  ;;  %v795_v37 = vmul.f32 %v793_v29, %v1312_v61  ;;  %v762_v54 = vadd.f32 %v754_v27, %v1251_v51  ;;  %v763_v48 = vadd.f32 %v755_v28, %v1259_v56 }
 0x434   :  { %v765_v41 = vadd.f32 %v757_v32, %v1261_v57  ;;  %v797_v59 = vmul.f32 %v793_v29, %v1325_v39  ;;  %v781_v61 = vrot.slane %v773_v49, 7  ;;  %v764_v36 = vadd.f32 %v756_v53, %v1253_v52 }
 0x435   :  { %v802_v38 = vrot.slane %v794_v33, 7  ;;  %v803_v50 = vrot.slane %v795_v37, 7  ;;  %v786_v40 = vadd.f32 %v778_v35, %v762_v54  ;;  %v787_v42 = vadd.f32 %v779_v46, %v763_v48 }
 0x436   :  { %v789_v62 = vadd.f32 %v781_v61, %v765_v41  ;;  %v805_v56 = vrot.slane %v797_v59, 7  ;;  %v796_v63 = vmul.f32 %v793_v29, %v1341_v25  ;;  %v788_v58 = vadd.f32 %v780_v55, %v764_v36 }
 0x437   :  { %v810_v60 = vadd.f32 %v802_v38, %v786_v40  ;;  %v811_v7 = vadd.f32 %v803_v50, %v787_v42  ;;  %v834_v25 = vrot.slane %v1393_v9, 7 }
 0x438   :  { %v813_v57 = vadd.f32 %v805_v56, %v789_v62  ;;  %v804_v39 = vrot.slane %v796_v63, 7 }
 0x439   :  { %v970_v45 = vmul.f32 -1.442695, %v810_v60  ;;  %v971_v51 = vmul.f32 -1.442695, %v811_v7 }
 0x43a   :  { %v972_v0 = vmul.f32 -1.442695, %v813_v57  ;;  %v812_v1 = vadd.f32 %v804_v39, %v788_v58 }
 0x43b   :  { %1063 = vpow2.f32 %v970_v45 }
 0x43c   :  { %1065 = vpow2.f32 %v971_v51 }
 0x43d   :  { %1067 = vpow2.f32 %v972_v0 }
 0x43e   :  { %1069 = vtanh.f32 %v812_v1 }
 0x445   :  { %v1064_v2 = vpop.eup %1063 }
 0x446   :  { %v1066_v44 = vpop.eup %1065  ;;  %v817_v3 = vadd.f32 1.0, %v1064_v2 }
 0x447   :  { %v823_v20 = vadd.f32 1.0, %v1066_v44  ;;  %v1068_v4 = vpop.eup %1067 }
 0x448   :  { %1071 = vrcp.f32 %v817_v3  ;;  %v1070_v52 = vpop.eup %1069  ;;  %v830_v10 = vadd.f32 1.0, %v1068_v4 }
 0x449   :  { %1073 = vrcp.f32 %v823_v20 }
 0x44a   :  { %1075 = vrcp.f32 %v830_v10 }
 0x452   :  { %v1072_v5 = vpop.eup %1071 }
 0x453   :  { %v1074_v6 = vpop.eup %1073  ;;  %v837_v11 = vmul.f32 %v1072_v5, %v1070_v52 }
 0x454   :  { %v836_v12 = vmul.f32 %v1074_v6, %v834_v25  ;;  %v1076_v15 = vpop.eup %1075 }
 0x456   :  { %v838_v13 = vadd.f32 %v837_v11, %v836_v12 }
 0x458   :  { %1077 = vtanh.f32 %v838_v13 }
 0x462   :  { %v1078_v31 = vpop.eup %1077 }
 0x463   :  { %v840_v34 = vmul.f32 %v1078_v31, %v1076_v15 }
 0x465   :  { %841 = vst [vmem:[#allocation2] sm:$0x10] %v840_v34 }
 0x46c   :  { %v842_v19 = vld [vmem:[#allocation2] sm:$0x1f] }
 0x46d   :  { %v846_v22 = vadd.f32 %v973_v47, %v842_v19 }
 0x46f   :  { %980 = vmatmul.mubr.msk.f32.vlgmr.msra.gmra.mrb[2].mxu0 %vm848_vm13, %v846_v22 }
 0x542   :  { %v918_v9 = vpop.f32.mrb[2].mxu0 }
 0x543   :  { %v981_v17 = vpop.f32.mrb[3].mxu0  ;;  %v923_v23 = vsel %vm922_vm14, %v918_v9, -inf }
 0x544   :  { %924 = vmax.xlane.f32.xlu1 %v923_v23 }
 0x5d1   :  { %v925_v16 = vpop.xlane.xlu1 %924 }
 0x5d2   :  { %v926_v24 = vsub.f32 %v918_v9, %v925_v16 }
 0x5d4   :  { %v927_v18 = vmul.f32 1.442695, %v926_v24 }
 0x5d6   :  { %1079 = vpow2.f32 %v927_v18 }
 0x5e0   :  { %v1080_v21 = vpop.eup %1079 }
 0x5e1   :  { %v929_v26 = vsel %vm922_vm14, %v1080_v21, 0.0 }
 0x5e2   :  { %930 = vadd.xlane.f32.xlu0 %v929_v26 }
 0x66f   :  { %v931_v14 = vpop.xlane.xlu0 %930 }
 0x670   :  { %1081 = vlog2.f32 %v931_v14 }
 0x67a   :  { %v1082_v8 = vpop.eup %1081 }
 0x67b   :  { %v933_v27 = vmul.f32 0.6931472, %v1082_v8 }
 0x67d   :  { %v934_v28 = vadd.f32 %v933_v27, %v925_v16 }
 0x67f   :  { %v935_v29 = vsub.f32 %v918_v9, %v934_v28 }
 0x681   :  { %936 = vst.msk [vmem:[%s1432_s4] sm:$0x1f] %vm922_vm14, %v935_v29 }
 0x682   :  { %941 = vsyncpa [#allocation4], 1 }
 0x683   :  { %942 = vsyncpa [#allocation8], 1 }
 0x684   :  { %943 = vsyncpa [#allocation5], 1 }

</bundles_post_ra>
